<compile_context>
chip_gen: v7x
topology: tpu7x:2x2x1
jax: 0.10.0
libtpu: 0.0.40
codegen_flags: <defaults>
</compile_context>

<pallas_src>
import functools

import jax
import jax.numpy as jnp
from jax.experimental import pallas as pl
from jax.experimental.pallas import tpu as pltpu


def _round_up(x, m):
    return ((x + m - 1) // m) * m


# ----------------------------- Pallas kernels -------------------------------


def _pass1_kernel(x_ref, mnt_ref, w1_ref, b1_ref, h1_ref, acc_ref):
    """Row tile: h1 = relu(x @ w1 + b1); emit bf16 h1; accumulate per-material mean of h1.

    Grid = (n_par, n_inner): outer axis "parallel" (one accumulator slab per TensorCore on
    v7x), inner axis "arbitrary" (accumulator block index constant -> stays resident in
    VMEM and is accumulated in place; written to HBM once per outer step).
    """
    @pl.when(pl.program_id(1) == 0)
    def _():
        acc_ref[...] = jnp.zeros_like(acc_ref)

    h1 = jnp.dot(x_ref[...], w1_ref[...],
                 preferred_element_type=jnp.float32) + b1_ref[...]
    h1 = jnp.maximum(h1, 0.0)
    h1_bf = h1.astype(jnp.bfloat16)
    h1_ref[...] = h1_bf
    # mnt is the count-normalized membership^T tile [Bp, T] (bf16-exact values kept as f32
    # to sidestep bf16 sublane packing at Bp=8); h1 is re-quantized to bf16 so the mean is
    # bit-deterministic regardless of the MXU's f32 pass scheme.
    acc_ref[...] += jnp.dot(mnt_ref[...], h1_bf.astype(jnp.float32),
                            preferred_element_type=jnp.float32)


def _pass2_kernel(h1_ref, m_ref, wm_ref, ws_ref, b2_ref, wh_ref, bh_ref, out_ref):
    """Row tile: h2 = relu(m @ wm + h1 @ ws + b2); fused lane-dense heads = h2 @ wh + bh."""
    h2 = (jnp.dot(m_ref[...], wm_ref[...], preferred_element_type=jnp.float32)
          + jnp.dot(h1_ref[...], ws_ref[...], preferred_element_type=jnp.float32)
          + b2_ref[...])
    h2 = jnp.maximum(h2, 0.0).astype(jnp.bfloat16)
    out_ref[...] = jnp.dot(h2, wh_ref[...],
                           preferred_element_type=jnp.float32) + bh_ref[...]


def d3pm_gnn_forward(x_feat, batch, num_materials, kparams, *, row_tile=512):
    """Fused GNN forward. Returns a lane-dense [N, Cpad] f32 logit slab (slice in caller)."""
    n, f_in = x_feat.shape
    fp, h = kparams["w1"].shape
    cpad = kparams["wh"].shape[1]

    # Row tiling: 512 rows/step amortizes per-grid-step overhead; shrink to the padded size
    # at small N.  If a single tile would cover everything but there is enough work, split
    # it in two (keeps both v7x TensorCores busy via the "parallel" grid axis).
    np_ = _round_up(max(n, 1), 128)
    row_tile = min(row_tile, np_)
    np_ = _round_up(np_, row_tile)
    n_tiles = np_ // row_tile
    if n_tiles == 1 and np_ >= 256 and (np_ // 2) % 128 == 0:
        row_tile = np_ // 2
        n_tiles = 2
    n_par = 2 if (n_tiles % 2 == 0) else 1
    n_inner = n_tiles // n_par

    bp = _round_up(max(num_materials, 1), 8)

    # bf16 node features, zero-padded to [Np, Fp].
    xp = jnp.zeros((np_, fp), jnp.bfloat16).at[:n, :f_in].set(x_feat.astype(jnp.bfloat16))

    # Count-normalized membership^T [Bp, Np], built directly (no [Np, Bp] one-hot +
    # transpose).  Padded rows (batch id -1) produce all-zero columns.  Values snapped to
    # the bf16 grid; array kept f32 (Bp=8 rows would not match bf16's 16-row sublanes).
    batch_p = jnp.full((np_,), -1, jnp.int32).at[:n].set(batch.astype(jnp.int32))
    mnt = (jnp.arange(bp, dtype=jnp.int32)[:, None] == batch_p[None, :]).astype(jnp.float32)
    counts = jnp.maximum(jnp.sum(mnt, axis=1, keepdims=True), 1.0)
    mnt = (mnt / counts).astype(jnp.bfloat16).astype(jnp.float32)

    cparams1 = pltpu.CompilerParams(
        dimension_semantics=("parallel", "arbitrary"),
        vmem_limit_bytes=32 * 1024 * 1024,
    )
    cparams2 = pltpu.CompilerParams(
        dimension_semantics=("parallel",),
        vmem_limit_bytes=32 * 1024 * 1024,
    )
    # TODO(synk): constant-index weight BlockSpecs could take pipeline_mode=pl.Buffered(1)
    # to halve their resident VMEM on v7x; at H=128 (~0.1 MiB of weights) it is noise.

    # ---- pass 1: h1 (bf16, row-tiled) + in-kernel per-material mean accumulator --------
    p1_flops = 2 * np_ * fp * h + 2 * np_ * bp * h
    p1_bytes = (2 * np_ * fp + 4 * bp * np_ + 2 * fp * h + 4 * h
                + 2 * np_ * h + 4 * n_par * bp * h)
    h1_out, acc = pl.pallas_call(
        _pass1_kernel,
        grid=(n_par, n_inner),
        in_specs=[
            pl.BlockSpec((row_tile, fp), lambda p, j: (p * n_inner + j, 0)),   # x tile (bf16)
            pl.BlockSpec((bp, row_tile), lambda p, j: (0, p * n_inner + j)),   # membership^T
            pl.BlockSpec((fp, h), lambda p, j: (0, 0)),                        # w1 (bf16)
            pl.BlockSpec((1, h), lambda p, j: (0, 0)),                         # b1 (f32)
        ],
        out_specs=(
            pl.BlockSpec((row_tile, h), lambda p, j: (p * n_inner + j, 0)),    # h1 (bf16)
            pl.BlockSpec((bp, h), lambda p, j: (p, 0)),                        # per-core acc
        ),
        out_shape=(
            jax.ShapeDtypeStruct((np_, h), jnp.bfloat16),
            jax.ShapeDtypeStruct((n_par * bp, h), jnp.float32),
        ),
        compiler_params=cparams1,
        cost_estimate=pl.CostEstimate(flops=p1_flops, transcendentals=0,
                                      bytes_accessed=p1_bytes),
    )(xp, mnt, kparams["w1"], kparams["b1"])

    # Tiny cross-core reduction, then gather each node's material mean in JAX: O(Np*H)
    # bytes independent of the number of materials; replaces the dense one-hot matmul.
    means = jnp.sum(acc.reshape(n_par, bp, h), axis=0)
    node_means = means[jnp.maximum(batch_p, 0)].astype(jnp.bfloat16)

    # ---- pass 2: message/self update (no concat; two K=H matmuls) + fused heads ---------
    p2_flops = 2 * np_ * (2 * h * h + h * cpad)
    p2_bytes = (2 * (2 * np_ * h) + 2 * (2 * h * h + h * cpad) + 4 * (h + cpad)
                + 4 * np_ * cpad)
    out = pl.pallas_call(
        _pass2_kernel,
        grid=(n_tiles,),
        in_specs=[
            pl.BlockSpec((row_tile, h), lambda i: (i, 0)),     # h1 tile (bf16)
            pl.BlockSpec((row_tile, h), lambda i: (i, 0)),     # per-node mean tile (bf16)
            pl.BlockSpec((h, h), lambda i: (0, 0)),            # wm (bf16)
            pl.BlockSpec((h, h), lambda i: (0, 0)),            # ws (bf16)
            pl.BlockSpec((1, h), lambda i: (0, 0)),            # b2 (f32)
            pl.BlockSpec((h, cpad), lambda i: (0, 0)),         # fused heads (bf16)
            pl.BlockSpec((1, cpad), lambda i: (0, 0)),         # fused head bias (f32)
        ],
        out_specs=pl.BlockSpec((row_tile, cpad), lambda i: (i, 0)),
        out_shape=jax.ShapeDtypeStruct((np_, cpad), jnp.float32),
        compiler_params=cparams2,
        cost_estimate=pl.CostEstimate(flops=p2_flops, transcendentals=0,
                                      bytes_accessed=p2_bytes),
    )(h1_out, node_means, kparams["wm"], kparams["ws"], kparams["b2"],
      kparams["wh"], kparams["bh"])

    return out[:n]


# ------------------------------- glue (JAX) ---------------------------------


def sinusoidal_t_embedding(t, dim):
    half = dim // 2
    freqs = jnp.exp(-jnp.log(1000.0) * jnp.arange(half, dtype=jnp.float32) / half)
    args = t.astype(jnp.float32)[:, None] * freqs[None, :]
    return jnp.concatenate([jnp.sin(args), jnp.cos(args)], axis=-1)


def build_node_features(data_t, t, spg_emb, t_emb_dim):
    x = data_t["x"]
    batch = data_t["batch"]
    dof_flag = data_t["zero_dof"].astype(jnp.float32)[:, None]
    node_spg = spg_emb[data_t["space_group"]][batch]
    node_t = sinusoidal_t_embedding(t, t_emb_dim)[batch]
    return jnp.concatenate([x, dof_flag, node_spg, node_t], axis=-1).astype(jnp.float32)


def build_params(key, f_in, hidden, c0, ci):
    ks = jax.random.split(key, 9)
    s = 0.1
    return {
        "w1": s * jax.random.normal(ks[0], (f_in, hidden), jnp.float32),
        "b1": s * jax.random.normal(ks[1], (hidden,), jnp.float32),
        "wm": s * jax.random.normal(ks[2], (hidden, hidden), jnp.float32),
        "ws": s * jax.random.normal(ks[3], (hidden, hidden), jnp.float32),
        "b2": s * jax.random.normal(ks[4], (hidden,), jnp.float32),
        "w0": s * jax.random.normal(ks[5], (hidden, c0), jnp.float32),
        "b0": s * jax.random.normal(ks[6], (c0,), jnp.float32),
        "wi": s * jax.random.normal(ks[7], (hidden, ci), jnp.float32),
        "bi": s * jax.random.normal(ks[8], (ci,), jnp.float32),
    }


def fuse_and_pad_params(params, f_in, *, lane=128):
    """bf16 matmul weights (f32 biases), fused w0|wi head, lane dims padded to 128."""
    hidden = params["w1"].shape[1]
    assert hidden % lane == 0, "hidden must be a multiple of 128 for lane-dense matmuls"
    c0 = params["w0"].shape[1]
    ci = params["wi"].shape[1]
    fp = _round_up(f_in, lane)
    cpad = _round_up(c0 + ci, lane)
    bf = jnp.bfloat16

    w1 = jnp.zeros((fp, hidden), bf).at[:f_in].set(params["w1"].astype(bf))
    wh = (jnp.zeros((hidden, cpad), bf)
          .at[:, :c0].set(params["w0"].astype(bf))
          .at[:, c0:c0 + ci].set(params["wi"].astype(bf)))
    bh = (jnp.zeros((1, cpad), jnp.float32)
          .at[:, :c0].set(params["b0"])
          .at[:, c0:c0 + ci].set(params["bi"]))
    return {
        "w1": w1,
        "b1": params["b1"].reshape(1, hidden).astype(jnp.float32),
        "wm": params["wm"].astype(bf),
        "ws": params["ws"].astype(bf),
        "b2": params["b2"].reshape(1, hidden).astype(jnp.float32),
        "wh": wh,
        "bh": bh,
    }


def d3pm_forward(data_t, t, kparams, *, num_elements, max_num_atoms, spg_emb, t_emb_dim):
    """Equivalent of D3PM.forward(data_t, t) -> (x0_0dof_pred_logits, x0_infdof_pred_logits)."""
    x_feat = build_node_features(data_t, t, spg_emb, t_emb_dim)
    n = x_feat.shape[0]
    num_materials = data_t["space_group"].shape[0]

    out = d3pm_gnn_forward(x_feat, data_t["batch"], num_materials, kparams)

    c0 = num_elements + 1
    ci = num_elements * (max_num_atoms + 1)
    x0_0dof_pred_logits = out[:, :c0]
    x0_infdof_pred_logits = out[:, c0:c0 + ci].reshape(n, num_elements, max_num_atoms + 1)
    return x0_0dof_pred_logits, x0_infdof_pred_logits


def reference_forward(data_t, t, params, *, num_elements, max_num_atoms, spg_emb, t_emb_dim):
    """Pure-JAX f32 dense reference (explicit [N,N] row-normalized adjacency, self-loops)."""
    x_feat = build_node_features(data_t, t, spg_emb, t_emb_dim)
    batch = data_t["batch"]
    n = x_feat.shape[0]
    hp = jax.lax.Precision.HIGHEST
    same = (batch[:, None] == batch[None, :]).astype(jnp.float32)
    adj = same / jnp.sum(same, axis=-1, keepdims=True)
    h1 = jax.nn.relu(jnp.dot(x_feat, params["w1"], precision=hp) + params["b1"])
    m = jnp.dot(adj, h1, precision=hp)
    h2 = jax.nn.relu(jnp.dot(m, params["wm"], precision=hp)
                     + jnp.dot(h1, params["ws"], precision=hp) + params["b2"])
    out0 = jnp.dot(h2, params["w0"], precision=hp) + params["b0"]
    outi = jnp.dot(h2, params["wi"], precision=hp) + params["bi"]
    return out0, outi.reshape(n, num_elements, max_num_atoms + 1)


def reference_forward_bf16(data_t, t, kparams, *, num_elements, max_num_atoms,
                           spg_emb, t_emb_dim):
    """Pure-JAX reference of the exact bf16-operand / f32-accumulate quantization used by
    the Pallas kernels (segment-mean formulation); should match to ~1e-5."""
    hp = jax.lax.Precision.HIGHEST
    f32, bf = jnp.float32, jnp.bfloat16
    x_feat = build_node_features(data_t, t, spg_emb, t_emb_dim)
    n, f_in = x_feat.shape
    batch = data_t["batch"].astype(jnp.int32)
    num_materials = data_t["space_group"].shape[0]

    x = x_feat.astype(bf).astype(f32)
    w1 = kparams["w1"][:f_in].astype(f32)
    h1 = jax.nn.relu(jnp.dot(x, w1, precision=hp) + kparams["b1"])
    h1b = h1.astype(bf).astype(f32)

    onehot = (batch[:, None] == jnp.arange(num_materials)[None, :]).astype(f32)
    cnts = jnp.maximum(jnp.sum(onehot, axis=0, keepdims=True), 1.0)
    mnt = (onehot / cnts).T.astype(bf).astype(f32)
    means = jnp.dot(mnt, h1b, precision=hp)
    m = means[batch].astype(bf).astype(f32)

    h2 = jax.nn.relu(jnp.dot(m, kparams["wm"].astype(f32), precision=hp)
                     + jnp.dot(h1b, kparams["ws"].astype(f32), precision=hp)
                     + kparams["b2"])
    h2b = h2.astype(bf).astype(f32)
    out = jnp.dot(h2b, kparams["wh"].astype(f32), precision=hp) + kparams["bh"]
    c0 = num_elements + 1
    ci = num_elements * (max_num_atoms + 1)
    return out[:, :c0], out[:, c0:c0 + ci].reshape(n, num_elements, max_num_atoms + 1)


# --------------------------------- main --------------------------------------


if __name__ == "__main__":
    key = jax.random.PRNGKey(0)

    # Small, forward-consistent shapes.
    num_elements = 4          # config['num_elements']
    max_num_atoms = 8         # config['max_num_atoms']
    t_max = 10                # config['t_max']
    num_materials = 2         # batch of materials
    nodes_per_material = 8    # Wyckoff positions per material
    hidden = 128              # lane-dense hidden width (multiple of 128)
    spg_dim = 4
    t_emb_dim = 8
    num_spg = 230

    n_total = num_materials * nodes_per_material
    c0 = num_elements + 1
    ci = num_elements * (max_num_atoms + 1)
    f_in = num_elements + 1 + spg_dim + t_emb_dim

    k_par, k_spg, k_x, k_dof, k_sg, k_t = jax.random.split(key, 6)
    params = build_params(k_par, f_in, hidden, c0, ci)
    kparams = fuse_and_pad_params(params, f_in)
    spg_emb = 0.1 * jax.random.normal(k_spg, (num_spg + 1, spg_dim), jnp.float32)

    # Synthetic noisy data_t (what get_noisy_data / sample_from_prior would produce).
    x_cat = jax.random.randint(k_x, (n_total, num_elements), 0, max_num_atoms + 1)
    x_mat = x_cat.astype(jnp.float32) / float(max_num_atoms)
    zero_dof = jax.random.bernoulli(k_dof, 0.4, (n_total,))
    batch = jnp.repeat(jnp.arange(num_materials), nodes_per_material)
    space_group = jax.random.randint(k_sg, (num_materials,), 1, num_spg + 1)
    t = jax.random.randint(k_t, (num_materials,), 1, t_max)

    data_t = {
        "x": x_mat,
        "zero_dof": zero_dof,
        "batch": batch,
        "space_group": space_group,
    }

    fwd = jax.jit(
        functools.partial(
            d3pm_forward,
            num_elements=num_elements,
            max_num_atoms=max_num_atoms,
            spg_emb=spg_emb,
            t_emb_dim=t_emb_dim,
        )
    )
    logits_0dof, logits_infdof = fwd(data_t, t, kparams)
    jax.block_until_ready((logits_0dof, logits_infdof))

    assert logits_0dof.shape == (n_total, num_elements + 1)
    assert logits_infdof.shape == (n_total, num_elements, max_num_atoms + 1)

    # Tight check vs a pure-JAX reference with the identical bf16 quantization points.
    q0, qi = reference_forward_bf16(
        data_t, t, kparams, num_elements=num_elements, max_num_atoms=max_num_atoms,
        spg_emb=spg_emb, t_emb_dim=t_emb_dim)
    assert jnp.allclose(logits_0dof, q0, atol=5e-3, rtol=5e-3)
    assert jnp.allclose(logits_infdof, qi, atol=5e-3, rtol=5e-3)

    # Loose, normalized-error check vs the full-f32 dense-adjacency reference (the bf16
    # operand cast makes a tight elementwise tolerance vs f32 inappropriate).
    ref0, refi = reference_forward(
        data_t, t, params, num_elements=num_elements, max_num_atoms=max_num_atoms,
        spg_emb=spg_emb, t_emb_dim=t_emb_dim)

    def rel_err(a, b):
        return float(jnp.linalg.norm((a - b).ravel())
                     / (jnp.linalg.norm(b.ravel()) + 1e-12))

    assert rel_err(logits_0dof, ref0) < 0.05
    assert rel_err(logits_infdof, refi) < 0.05

    # TODO(synk): the exact GNN architecture (registry.get_gnn_class(config['gnn'])) is
    # config-dependent and not specified in the module source; a representative dense
    # message-passing GNN is implemented here with the hot path fused into Pallas kernels.
    print("KERNEL_OK")
</pallas_src>

<mosaic_0001>
module attributes {stable_mosaic.version = 11 : i64} {
  func.func @_pass1_kernel(%arg0: i32, %arg1: i32, %arg2: memref<128x128xbf16, #tpu.memory_space<vmem>>, %arg3: memref<8x128xf32, #tpu.memory_space<vmem>>, %arg4: memref<128x128xbf16, #tpu.memory_space<vmem>>, %arg5: memref<1x128xf32, #tpu.memory_space<vmem>>, %arg6: memref<128x128xbf16, #tpu.memory_space<vmem>>, %arg7: memref<8x128xf32, #tpu.memory_space<vmem>>) attributes {dimension_semantics = [#tpu.dimension_semantics<parallel>, #tpu.dimension_semantics<arbitrary>], iteration_bounds = array<i64: 1, 1>, scalar_prefetch = 0 : i64, scratch_operands = 0 : i64, tpu.core_type = #tpu.core_type<tc>, window_params = [{transform_indices = @transform_0, window_bounds = array<i64: 128, 128>}, {transform_indices = @transform_1, window_bounds = array<i64: 8, 128>}, {pipeline_mode = #tpu.pipeline_mode<synchronous>, transform_indices = @transform_2, window_bounds = array<i64: 128, 128>}, {pipeline_mode = #tpu.pipeline_mode<synchronous>, transform_indices = @transform_3, window_bounds = array<i64: 1, 128>}, {transform_indices = @transform_4, window_bounds = array<i64: 128, 128>}, {transform_indices = @transform_5, window_bounds = array<i64: 8, 128>}]} {
    %c0_i32 = arith.constant 0 : i32
    %0 = arith.cmpi eq, %arg1, %c0_i32 : i32
    %1 = arith.extui %0 : i1 to i32
    %c0_i32_0 = arith.constant 0 : i32
    %2 = arith.cmpi ne, %1, %c0_i32_0 : i32
    scf.if %2 {
      %cst_16 = arith.constant 0.000000e+00 : f32
      %19 = vector.broadcast %cst_16 : f32 to vector<8x128xf32>
      %c0_17 = arith.constant 0 : index
      %c0_18 = arith.constant 0 : index
      %20 = vector.load %arg7[%c0_17, %c0_18] : memref<8x128xf32, #tpu.memory_space<vmem>>, vector<8x128xf32>
      tpu.vector_store %arg7[%c0_17, %c0_18], %19 {strides = array<i32>} : memref<8x128xf32, #tpu.memory_space<vmem>>, vector<8x128xf32>,
    } else {
    }
    %c0 = arith.constant 0 : index
    %c0_1 = arith.constant 0 : index
    %3 = vector.load %arg2[%c0, %c0_1] : memref<128x128xbf16, #tpu.memory_space<vmem>>, vector<128x128xbf16>
    %c0_2 = arith.constant 0 : index
    %c0_3 = arith.constant 0 : index
    %4 = vector.load %arg4[%c0_2, %c0_3] : memref<128x128xbf16, #tpu.memory_space<vmem>>, vector<128x128xbf16>
    %cst = arith.constant dense<0.000000e+00> : vector<128x128xf32>
    %5 = tpu.matmul %3, %4, %cst {dimension_numbers = #tpu.dot_dimension_numbers<[1], [0], [0], [1], [0, 0, 1, 1], [], []>} : vector<128x128xbf16>, vector<128x128xbf16>, vector<128x128xf32> -> vector<128x128xf32>
    %c0_4 = arith.constant 0 : index
    %c0_5 = arith.constant 0 : index
    %6 = vector.load %arg5[%c0_4, %c0_5] : memref<1x128xf32, #tpu.memory_space<vmem>>, vector<1x128xf32>
    %7 = vector.broadcast %6 : vector<1x128xf32> to vector<128x128xf32>
    %8 = arith.addf %5, %7 : vector<128x128xf32>
    %cst_6 = arith.constant 0.000000e+00 : f32
    %9 = vector.broadcast %cst_6 : f32 to vector<128x128xf32>
    %10 = arith.maximumf %8, %9 : vector<128x128xf32>
    %11 = arith.truncf %10 : vector<128x128xf32> to vector<128x128xbf16>
    %c0_7 = arith.constant 0 : index
    %c0_8 = arith.constant 0 : index
    %12 = vector.load %arg6[%c0_7, %c0_8] : memref<128x128xbf16, #tpu.memory_space<vmem>>, vector<128x128xbf16>
    tpu.vector_store %arg6[%c0_7, %c0_8], %11 {strides = array<i32>} : memref<128x128xbf16, #tpu.memory_space<vmem>>, vector<128x128xbf16>,
    %c0_9 = arith.constant 0 : index
    %c0_10 = arith.constant 0 : index
    %13 = vector.load %arg7[%c0_9, %c0_10] : memref<8x128xf32, #tpu.memory_space<vmem>>, vector<8x128xf32>
    %c0_11 = arith.constant 0 : index
    %c0_12 = arith.constant 0 : index
    %14 = vector.load %arg3[%c0_11, %c0_12] : memref<8x128xf32, #tpu.memory_space<vmem>>, vector<8x128xf32>
    %15 = arith.extf %11 : vector<128x128xbf16> to vector<128x128xf32>
    %cst_13 = arith.constant dense<0.000000e+00> : vector<8x128xf32>
    %16 = tpu.matmul %14, %15, %cst_13 {dimension_numbers = #tpu.dot_dimension_numbers<[1], [0], [0], [1], [0, 0, 1, 1], [], []>} : vector<8x128xf32>, vector<128x128xf32>, vector<8x128xf32> -> vector<8x128xf32>
    %17 = arith.addf %13, %16 : vector<8x128xf32>
    %c0_14 = arith.constant 0 : index
    %c0_15 = arith.constant 0 : index
    %18 = vector.load %arg7[%c0_14, %c0_15] : memref<8x128xf32, #tpu.memory_space<vmem>>, vector<8x128xf32>
    tpu.vector_store %arg7[%c0_14, %c0_15], %17 {strides = array<i32>} : memref<8x128xf32, #tpu.memory_space<vmem>>, vector<8x128xf32>,
    return
  }
  func.func @transform_0(%arg0: i32, %arg1: i32) -> (i32, i32) {
    %c1_i32 = arith.constant 1 : i32
    %0 = arith.muli %arg0, %c1_i32 : i32
    %1 = arith.addi %0, %arg1 : i32
    %c0_i32 = arith.constant 0 : i32
    %c0_i32_0 = arith.constant 0 : i32
    return %1, %c0_i32 : i32, i32
  }
  func.func @transform_1(%arg0: i32, %arg1: i32) -> (i32, i32) {
    %c1_i32 = arith.constant 1 : i32
    %0 = arith.muli %arg0, %c1_i32 : i32
    %1 = arith.addi %0, %arg1 : i32
    %c0_i32 = arith.constant 0 : i32
    %c0_i32_0 = arith.constant 0 : i32
    return %c0_i32, %1 : i32, i32
  }
  func.func @transform_2(%arg0: i32, %arg1: i32) -> (i32, i32) {
    %c0_i32 = arith.constant 0 : i32
    %c0_i32_0 = arith.constant 0 : i32
    %c0_i32_1 = arith.constant 0 : i32
    return %c0_i32, %c0_i32_0 : i32, i32
  }
  func.func @transform_3(%arg0: i32, %arg1: i32) -> (i32, i32) {
    %c0_i32 = arith.constant 0 : i32
    %c0_i32_0 = arith.constant 0 : i32
    %c0_i32_1 = arith.constant 0 : i32
    return %c0_i32, %c0_i32_0 : i32, i32
  }
  func.func @transform_4(%arg0: i32, %arg1: i32) -> (i32, i32) {
    %c1_i32 = arith.constant 1 : i32
    %0 = arith.muli %arg0, %c1_i32 : i32
    %1 = arith.addi %0, %arg1 : i32
    %c0_i32 = arith.constant 0 : i32
    %c0_i32_0 = arith.constant 0 : i32
    return %1, %c0_i32 : i32, i32
  }
  func.func @transform_5(%arg0: i32, %arg1: i32) -> (i32, i32) {
    %c0_i32 = arith.constant 0 : i32
    %c0_i32_0 = arith.constant 0 : i32
    return %arg0, %c0_i32 : i32, i32
  }
}

module attributes {stable_mosaic.version = 11 : i64} {
  func.func @_pass2_kernel(%arg0: i32, %arg1: memref<128x128xbf16, #tpu.memory_space<vmem>>, %arg2: memref<128x128xbf16, #tpu.memory_space<vmem>>, %arg3: memref<128x128xbf16, #tpu.memory_space<vmem>>, %arg4: memref<128x128xbf16, #tpu.memory_space<vmem>>, %arg5: memref<1x128xf32, #tpu.memory_space<vmem>>, %arg6: memref<128x128xbf16, #tpu.memory_space<vmem>>, %arg7: memref<1x128xf32, #tpu.memory_space<vmem>>, %arg8: memref<128x128xf32, #tpu.memory_space<vmem>>) attributes {dimension_semantics = [#tpu.dimension_semantics<parallel>], iteration_bounds = array<i64: 1>, scalar_prefetch = 0 : i64, scratch_operands = 0 : i64, tpu.core_type = #tpu.core_type<tc>, window_params = [{transform_indices = @transform_0, window_bounds = array<i64: 128, 128>}, {transform_indices = @transform_1, window_bounds = array<i64: 128, 128>}, {pipeline_mode = #tpu.pipeline_mode<synchronous>, transform_indices = @transform_2, window_bounds = array<i64: 128, 128>}, {pipeline_mode = #tpu.pipeline_mode<synchronous>, transform_indices = @transform_3, window_bounds = array<i64: 128, 128>}, {pipeline_mode = #tpu.pipeline_mode<synchronous>, transform_indices = @transform_4, window_bounds = array<i64: 1, 128>}, {pipeline_mode = #tpu.pipeline_mode<synchronous>, transform_indices = @transform_5, window_bounds = array<i64: 128, 128>}, {pipeline_mode = #tpu.pipeline_mode<synchronous>, transform_indices = @transform_6, window_bounds = array<i64: 1, 128>}, {transform_indices = @transform_7, window_bounds = array<i64: 128, 128>}]} {
    %c0 = arith.constant 0 : index
    %c0_0 = arith.constant 0 : index
    %0 = vector.load %arg2[%c0, %c0_0] : memref<128x128xbf16, #tpu.memory_space<vmem>>, vector<128x128xbf16>
    %c0_1 = arith.constant 0 : index
    %c0_2 = arith.constant 0 : index
    %1 = vector.load %arg3[%c0_1, %c0_2] : memref<128x128xbf16, #tpu.memory_space<vmem>>, vector<128x128xbf16>
    %cst = arith.constant dense<0.000000e+00> : vector<128x128xf32>
    %2 = tpu.matmul %0, %1, %cst {dimension_numbers = #tpu.dot_dimension_numbers<[1], [0], [0], [1], [0, 0, 1, 1], [], []>} : vector<128x128xbf16>, vector<128x128xbf16>, vector<128x128xf32> -> vector<128x128xf32>
    %c0_3 = arith.constant 0 : index
    %c0_4 = arith.constant 0 : index
    %3 = vector.load %arg1[%c0_3, %c0_4] : memref<128x128xbf16, #tpu.memory_space<vmem>>, vector<128x128xbf16>
    %c0_5 = arith.constant 0 : index
    %c0_6 = arith.constant 0 : index
    %4 = vector.load %arg4[%c0_5, %c0_6] : memref<128x128xbf16, #tpu.memory_space<vmem>>, vector<128x128xbf16>
    %cst_7 = arith.constant dense<0.000000e+00> : vector<128x128xf32>
    %5 = tpu.matmul %3, %4, %cst_7 {dimension_numbers = #tpu.dot_dimension_numbers<[1], [0], [0], [1], [0, 0, 1, 1], [], []>} : vector<128x128xbf16>, vector<128x128xbf16>, vector<128x128xf32> -> vector<128x128xf32>
    %6 = arith.addf %2, %5 : vector<128x128xf32>
    %c0_8 = arith.constant 0 : index
    %c0_9 = arith.constant 0 : index
    %7 = vector.load %arg5[%c0_8, %c0_9] : memref<1x128xf32, #tpu.memory_space<vmem>>, vector<1x128xf32>
    %8 = vector.broadcast %7 : vector<1x128xf32> to vector<128x128xf32>
    %9 = arith.addf %6, %8 : vector<128x128xf32>
    %cst_10 = arith.constant 0.000000e+00 : f32
    %10 = vector.broadcast %cst_10 : f32 to vector<128x128xf32>
    %11 = arith.maximumf %9, %10 : vector<128x128xf32>
    %12 = arith.truncf %11 : vector<128x128xf32> to vector<128x128xbf16>
    %c0_11 = arith.constant 0 : index
    %c0_12 = arith.constant 0 : index
    %13 = vector.load %arg6[%c0_11, %c0_12] : memref<128x128xbf16, #tpu.memory_space<vmem>>, vector<128x128xbf16>
    %cst_13 = arith.constant dense<0.000000e+00> : vector<128x128xf32>
    %14 = tpu.matmul %12, %13, %cst_13 {dimension_numbers = #tpu.dot_dimension_numbers<[1], [0], [0], [1], [0, 0, 1, 1], [], []>} : vector<128x128xbf16>, vector<128x128xbf16>, vector<128x128xf32> -> vector<128x128xf32>
    %c0_14 = arith.constant 0 : index
    %c0_15 = arith.constant 0 : index
    %15 = vector.load %arg7[%c0_14, %c0_15] : memref<1x128xf32, #tpu.memory_space<vmem>>, vector<1x128xf32>
    %16 = vector.broadcast %15 : vector<1x128xf32> to vector<128x128xf32>
    %17 = arith.addf %14, %16 : vector<128x128xf32>
    %c0_16 = arith.constant 0 : index
    %c0_17 = arith.constant 0 : index
    %18 = vector.load %arg8[%c0_16, %c0_17] : memref<128x128xf32, #tpu.memory_space<vmem>>, vector<128x128xf32>
    tpu.vector_store %arg8[%c0_16, %c0_17], %17 {strides = array<i32>} : memref<128x128xf32, #tpu.memory_space<vmem>>, vector<128x128xf32>,
    return
  }
  func.func @transform_0(%arg0: i32) -> (i32, i32) {
    %c0_i32 = arith.constant 0 : i32
    %c0_i32_0 = arith.constant 0 : i32
    return %arg0, %c0_i32 : i32, i32
  }
  func.func @transform_1(%arg0: i32) -> (i32, i32) {
    %c0_i32 = arith.constant 0 : i32
    %c0_i32_0 = arith.constant 0 : i32
    return %arg0, %c0_i32 : i32, i32
  }
  func.func @transform_2(%arg0: i32) -> (i32, i32) {
    %c0_i32 = arith.constant 0 : i32
    %c0_i32_0 = arith.constant 0 : i32
    %c0_i32_1 = arith.constant 0 : i32
    return %c0_i32, %c0_i32_0 : i32, i32
  }
  func.func @transform_3(%arg0: i32) -> (i32, i32) {
    %c0_i32 = arith.constant 0 : i32
    %c0_i32_0 = arith.constant 0 : i32
    %c0_i32_1 = arith.constant 0 : i32
    return %c0_i32, %c0_i32_0 : i32, i32
  }
  func.func @transform_4(%arg0: i32) -> (i32, i32) {
    %c0_i32 = arith.constant 0 : i32
    %c0_i32_0 = arith.constant 0 : i32
    %c0_i32_1 = arith.constant 0 : i32
    return %c0_i32, %c0_i32_0 : i32, i32
  }
  func.func @transform_5(%arg0: i32) -> (i32, i32) {
    %c0_i32 = arith.constant 0 : i32
    %c0_i32_0 = arith.constant 0 : i32
    %c0_i32_1 = arith.constant 0 : i32
    return %c0_i32, %c0_i32_0 : i32, i32
  }
  func.func @transform_6(%arg0: i32) -> (i32, i32) {
    %c0_i32 = arith.constant 0 : i32
    %c0_i32_0 = arith.constant 0 : i32
    %c0_i32_1 = arith.constant 0 : i32
    return %c0_i32, %c0_i32_0 : i32, i32
  }
  func.func @transform_7(%arg0: i32) -> (i32, i32) {
    %c0_i32 = arith.constant 0 : i32
    %c0_i32_0 = arith.constant 0 : i32
    return %arg0, %c0_i32 : i32, i32
  }
}

</mosaic_0001>

<bundles_post_ra>
// kernel: d3pm_forward.2
= control target key start
LH: loop header
LB: loop body
LE: loop exit
PB: predicated region body
PF: predicated region fallthrough
CT: control target
= control target key end

     0   :  { %v777_v16 = vmov 0.0|0.0   ;;  %vm778_vm0 = vmmov 0   ;;  %v779_v17 = vmov 0.0   ;;  %s917_s2 = inlined_call_operand.vmem [shape: bf16[128,128], index: 2, kind: input, shape index: {}]   ;;  %s918_s0 = inlined_call_operand.vmem [shape: bf16[128,128], index: 0, kind: input, shape index: {}]   ;;  %s919_s3 = inlined_call_operand.vmem [shape: f32[1,128], index: 3, kind: input, shape index: {}]   ;;  %s920_s4 = inlined_call_operand.vmem [shape: bf16[128,128], index: 4, kind: output, shape index: {0}]   ;;  %s921_s1 = inlined_call_operand.vmem [shape: f32[8,128], index: 1, kind: input, shape index: {}]   ;;  %s922_s5 = inlined_call_operand.vmem [shape: f32[8,128], index: 5, kind: output, shape index: {1}]  }
   0x1   :  { %v761_v0 = vld [vmem:[%s917_s2] sm:$0xff]   ;;  %v762_v1 = vld [vmem:[%s917_s2 + $0x8] sm:$0xff]   ;;  %v763_v2 = vld [vmem:[%s917_s2 + $0x10] sm:$0xff]   ;;  %734 = vmatprep.subr.bf16.mxu1 %v777_v16  ;;  %731 = vmatprep.mubr.msk.f32.mxu1 %vm778_vm0, %v779_v17 }
   0x2   :  { %667 = vmatprep.subr.bf16.mxu0 %v761_v0  ;;  %v764_v3 = vld [vmem:[%s917_s2 + $0x18] sm:$0xff]   ;;  %v769_v4 = vld [vmem:[%s918_s0] sm:$0xff]   ;;  %v766_v6 = vld [vmem:[%s917_s2 + $0x28] sm:$0xff]  }
   0x3   :  { %668 = vmatpush3.bf16.msra.mxu0 %v761_v0  ;;  %683 = vmatprep.mubr.bf16.mxu0 %v769_v4  ;;  %v765_v5 = vld [vmem:[%s917_s2 + $0x20] sm:$0xff]   ;;  %v767_v7 = vld [vmem:[%s917_s2 + $0x30] sm:$0xff]   ;;  %v768_v8 = vld [vmem:[%s917_s2 + $0x38] sm:$0xff]  }
   0x4   :  { %669 = vmatprep.subr.bf16.mxu0 %v762_v1  ;;  %v770_v9 = vld [vmem:[%s918_s0 + $0x8] sm:$0xff]   ;;  %v771_v10 = vld [vmem:[%s918_s0 + $0x10] sm:$0xff]   ;;  %v772_v11 = vld [vmem:[%s918_s0 + $0x18] sm:$0xff]  }
   0x5   :  { %v773_v12 = vld [vmem:[%s918_s0 + $0x20] sm:$0xff]   ;;  %v774_v13 = vld [vmem:[%s918_s0 + $0x28] sm:$0xff]   ;;  %v775_v14 = vld [vmem:[%s918_s0 + $0x30] sm:$0xff]  }
   0x6   :  { %v776_v15 = vld [vmem:[%s918_s0 + $0x38] sm:$0xff]   ;;  %v862_v18 = vld [vmem:[%s919_s3] ss:$0 sm:$0xff] }
   0x7   :  { %670 = vmatpush3.bf16.msra.mxu0 %v762_v1 }
   0x8   :  { %671 = vmatprep.subr.bf16.mxu0 %v763_v2 }
   0xb   :  { %672 = vmatpush3.bf16.msra.mxu0 %v763_v2 }
   0xc   :  { %673 = vmatprep.subr.bf16.mxu0 %v764_v3 }
   0xf   :  { %674 = vmatpush3.bf16.msra.mxu0 %v764_v3 }
  0x10   :  { %675 = vmatprep.subr.bf16.mxu0 %v765_v5 }
  0x13   :  { %676 = vmatpush3.bf16.msra.mxu0 %v765_v5 }
  0x14   :  { %677 = vmatprep.subr.bf16.mxu0 %v766_v6 }
  0x17   :  { %678 = vmatpush3.bf16.msra.mxu0 %v766_v6 }
  0x18   :  { %679 = vmatprep.subr.bf16.mxu0 %v767_v7 }
  0x1b   :  { %680 = vmatpush3.bf16.msra.mxu0 %v767_v7 }
  0x1c   :  { %681 = vmatprep.subr.bf16.mxu0 %v768_v8 }
  0x1f   :  { %682 = vmatpush3.bf16.msra.mxu0 %v768_v8 }
  0x22   :  { %684 = vmatmul.mubr.bf16.vlgmr.msra.gmra.mrb[0].mxu0 %v770_v9 }
  0x23   :  { %687 = vmatprep.mubr.bf16.mxu0 %v771_v10 }
  0x2a   :  { %688 = vmatmul.mubr.bf16.gmra.mrb[4].mxu0 %v772_v11  ;;  %v407_v11 = vld [vmem:[%s921_s1] sm:$0xff] }
  0x2b   :  { %691 = vmatprep.mubr.bf16.mxu0 %v773_v12 }
  0x32   :  { %692 = vmatmul.mubr.bf16.gmra.mrb[8].mxu0 %v774_v13 }
  0x33   :  { %695 = vmatprep.mubr.bf16.mxu0 %v775_v14 }
  0x3a   :  { %696 = vmatmul.mubr.bf16.gmra.mrb[12].mxu0 %v776_v15 }
  0xf5   :  { %v685_v19 = vpop.f32.mrb[0].mxu0 }
  0xf6   :  { %v256_v20 = vadd.f32 %v685_v19, %v862_v18  ;;  %v247_v21 = vpop.f32.mrb[1].mxu0 }
  0xf7   :  { %v248_v22 = vadd.f32 %v862_v18, %v247_v21  ;;  %v686_v23 = vpop.f32.mrb[2].mxu0 }
  0xf8   :  { %v259_v24 = vadd.f32 %v686_v23, %v862_v18  ;;  %v250_v25 = vpop.f32.mrb[3].mxu0  ;;  %v312_v27 = vmax.f32 %v256_v20, 0.0 }
  0xf9   :  { %v251_v26 = vadd.f32 %v862_v18, %v250_v25  ;;  %v310_v29 = vmax.f32 %v248_v22, 0.0 }
  0xfa   :  { %v313_v28 = vmax.f32 %v259_v24, 0.0 }
  0xfb   :  { %v311_v30 = vmax.f32 %v251_v26, 0.0 }
  0xfc   :  { %v327_v31 = vpack.c.bf16 %v313_v28, %v312_v27 }
  0xfd   :  { %v689_v32 = vpop.f32.mrb[4].mxu0  ;;  %v326_v33 = vpack.c.bf16 %v311_v30, %v310_v29 }
  0xfe   :  { %627 = vst [vmem:[%s920_s4 + $0x8] sm:$0xff] %v327_v31   ;;  %v272_v34 = vadd.f32 %v689_v32, %v862_v18  ;;  %v263_v35 = vpop.f32.mrb[5].mxu0 }
  0xff   :  { %v264_v36 = vadd.f32 %v862_v18, %v263_v35  ;;  %v690_v37 = vpop.f32.mrb[6].mxu0  ;;  %591 = vst [vmem:[%s920_s4] sm:$0xff] %v326_v33   ;;  %736 = vmatpush3.bf16.msra.mxu1 %v326_v33 }
 0x100   :  { %v275_v38 = vadd.f32 %v690_v37, %v862_v18  ;;  %v266_v39 = vpop.f32.mrb[7].mxu0  ;;  %737 = vmatprep.subr.bf16.mxu1 %v777_v16  ;;  %v316_v41 = vmax.f32 %v272_v34, 0.0 }
 0x101   :  { %v267_v40 = vadd.f32 %v862_v18, %v266_v39  ;;  %v314_v43 = vmax.f32 %v264_v36, 0.0 }
 0x102   :  { %v317_v42 = vmax.f32 %v275_v38, 0.0 }
 0x103   :  { %v315_v44 = vmax.f32 %v267_v40, 0.0  ;;  %739 = vmatpush3.bf16.msra.mxu1 %v327_v31 }
 0x104   :  { %v329_v45 = vpack.c.bf16 %v317_v42, %v316_v41  ;;  %740 = vmatprep.subr.bf16.mxu1 %v777_v16 }
 0x105   :  { %v328_v46 = vpack.c.bf16 %v315_v44, %v314_v43  ;;  %v693_v47 = vpop.f32.mrb[8].mxu0 }
 0x106   :  { %629 = vst [vmem:[%s920_s4 + $0x18] sm:$0xff] %v329_v45   ;;  %v288_v48 = vadd.f32 %v693_v47, %v862_v18  ;;  %v279_v49 = vpop.f32.mrb[9].mxu0 }
 0x107   :  { %628 = vst [vmem:[%s920_s4 + $0x10] sm:$0xff] %v328_v46   ;;  %v280_v50 = vadd.f32 %v862_v18, %v279_v49  ;;  %v694_v51 = vpop.f32.mrb[10].mxu0  ;;  %742 = vmatpush3.bf16.msra.mxu1 %v328_v46 }
 0x108   :  { %v291_v52 = vadd.f32 %v694_v51, %v862_v18  ;;  %v282_v53 = vpop.f32.mrb[11].mxu0  ;;  %743 = vmatprep.subr.bf16.mxu1 %v777_v16  ;;  %v320_v55 = vmax.f32 %v288_v48, 0.0 }
 0x109   :  { %v283_v54 = vadd.f32 %v862_v18, %v282_v53  ;;  %v318_v57 = vmax.f32 %v280_v50, 0.0 }
 0x10a   :  { %v321_v56 = vmax.f32 %v291_v52, 0.0 }
 0x10b   :  { %v319_v58 = vmax.f32 %v283_v54, 0.0  ;;  %745 = vmatpush3.bf16.msra.mxu1 %v329_v45 }
 0x10c   :  { %v331_v59 = vpack.c.bf16 %v321_v56, %v320_v55  ;;  %746 = vmatprep.subr.bf16.mxu1 %v777_v16 }
 0x10d   :  { %v330_v60 = vpack.c.bf16 %v319_v58, %v318_v57  ;;  %v697_v61 = vpop.f32.mrb[12].mxu0 }
 0x10e   :  { %631 = vst [vmem:[%s920_s4 + $0x28] sm:$0xff] %v331_v59   ;;  %v304_v62 = vadd.f32 %v697_v61, %v862_v18  ;;  %v295_v63 = vpop.f32.mrb[13].mxu0 }
 0x10f   :  { %630 = vst [vmem:[%s920_s4 + $0x20] sm:$0xff] %v330_v60   ;;  %v296_v0 = vadd.f32 %v862_v18, %v295_v63  ;;  %v698_v1 = vpop.f32.mrb[14].mxu0  ;;  %748 = vmatpush3.bf16.msra.mxu1 %v330_v60 }
 0x110   :  { %v307_v2 = vadd.f32 %v698_v1, %v862_v18  ;;  %v298_v3 = vpop.f32.mrb[15].mxu0  ;;  %749 = vmatprep.subr.bf16.mxu1 %v777_v16  ;;  %v324_v5 = vmax.f32 %v304_v62, 0.0 }
 0x111   :  { %v299_v4 = vadd.f32 %v862_v18, %v298_v3  ;;  %v322_v7 = vmax.f32 %v296_v0, 0.0 }
 0x112   :  { %v325_v6 = vmax.f32 %v307_v2, 0.0 }
 0x113   :  { %v323_v8 = vmax.f32 %v299_v4, 0.0  ;;  %751 = vmatpush3.bf16.msra.mxu1 %v331_v59 }
 0x114   :  { %v333_v9 = vpack.c.bf16 %v325_v6, %v324_v5  ;;  %752 = vmatprep.subr.bf16.mxu1 %v777_v16 }
 0x115   :  { %v332_v10 = vpack.c.bf16 %v323_v8, %v322_v7 }
 0x116   :  { %633 = vst [vmem:[%s920_s4 + $0x38] sm:$0xff] %v333_v9  }
 0x117   :  { %632 = vst [vmem:[%s920_s4 + $0x30] sm:$0xff] %v332_v10   ;;  %754 = vmatpush3.bf16.msra.mxu1 %v332_v10 }
 0x118   :  { %755 = vmatprep.subr.bf16.mxu1 %v777_v16 }
 0x11b   :  { %757 = vmatpush3.bf16.msra.mxu1 %v333_v9 }
 0x11e   :  { %732 = vmatmul.mubr.f32.vlgmr.msra.gmra.mrb[0].mxu1 %v407_v11 }
 0x1f1   :  { %v490_v12 = vpop.f32.mrb[0].mxu1 }
 0x1f2   :  { %v733_v13 = vpop.f32.mrb[1].mxu1  ;;  %495 = vst [vmem:[%s922_s5] sm:$0xff] %v490_v12 }

// kernel: d3pm_forward.3
= control target key start
LH: loop header
LB: loop body
LE: loop exit
PB: predicated region body
PF: predicated region fallthrough
CT: control target
= control target key end

     0   :  { %s1168_s3 = inlined_call_operand.vmem [shape: bf16[128,128], index: 3, kind: input, shape index: {}]   ;;  %s1169_s0 = inlined_call_operand.vmem [shape: bf16[128,128], index: 0, kind: input, shape index: {}]   ;;  %s1170_s2 = inlined_call_operand.vmem [shape: bf16[128,128], index: 2, kind: input, shape index: {}]   ;;  %s1171_s1 = inlined_call_operand.vmem [shape: bf16[128,128], index: 1, kind: input, shape index: {}]   ;;  %s1172_s5 = inlined_call_operand.vmem [shape: bf16[128,128], index: 5, kind: input, shape index: {}]   ;;  %s1173_s4 = inlined_call_operand.vmem [shape: f32[1,128], index: 4, kind: input, shape index: {}]   ;;  %s1174_s6 = inlined_call_operand.vmem [shape: f32[1,128], index: 6, kind: input, shape index: {}]   ;;  %s1175_s7 = inlined_call_operand.vmem [shape: f32[128,128], index: 7, kind: output, shape index: {}]  }
   0x1   :  { %v914_v0 = vld [vmem:[%s1168_s3] sm:$0xff]   ;;  %v915_v1 = vld [vmem:[%s1168_s3 + $0x8] sm:$0xff]   ;;  %v916_v2 = vld [vmem:[%s1168_s3 + $0x10] sm:$0xff]  }
   0x2   :  { %802 = vmatprep.subr.bf16.mxu0 %v914_v0  ;;  %v917_v3 = vld [vmem:[%s1168_s3 + $0x18] sm:$0xff]   ;;  %v922_v4 = vld [vmem:[%s1169_s0] sm:$0xff]   ;;  %v919_v6 = vld [vmem:[%s1168_s3 + $0x28] sm:$0xff]  }
   0x3   :  { %803 = vmatpush3.bf16.msra.mxu0 %v914_v0  ;;  %818 = vmatprep.mubr.bf16.mxu0 %v922_v4  ;;  %v918_v5 = vld [vmem:[%s1168_s3 + $0x20] sm:$0xff]   ;;  %v920_v7 = vld [vmem:[%s1168_s3 + $0x30] sm:$0xff]   ;;  %v921_v8 = vld [vmem:[%s1168_s3 + $0x38] sm:$0xff]  }
   0x4   :  { %804 = vmatprep.subr.bf16.mxu0 %v915_v1  ;;  %v924_v9 = vld [vmem:[%s1170_s2] sm:$0xff]   ;;  %v923_v10 = vld [vmem:[%s1169_s0 + $0x8] sm:$0xff]   ;;  %v926_v12 = vld [vmem:[%s1169_s0 + $0x10] sm:$0xff]  }
   0x5   :  { %v925_v11 = vld [vmem:[%s1170_s2 + $0x8] sm:$0xff]   ;;  %v946_v13 = vld [vmem:[%s1172_s5] sm:$0xff]   ;;  %v927_v15 = vld [vmem:[%s1169_s0 + $0x18] sm:$0xff]  }
   0x6   :  { %v947_v14 = vld [vmem:[%s1172_s5 + $0x8] sm:$0xff]   ;;  %866 = vmatprep.subr.bf16.mxu1 %v946_v13  ;;  %v928_v16 = vld [vmem:[%s1170_s2 + $0x10] sm:$0xff]   ;;  %v930_v18 = vld [vmem:[%s1169_s0 + $0x20] sm:$0xff]  }
   0x7   :  { %805 = vmatpush3.bf16.msra.mxu0 %v915_v1  ;;  %867 = vmatpush3.bf16.msra.mxu1 %v946_v13  ;;  %v948_v17 = vld [vmem:[%s1172_s5 + $0x10] sm:$0xff]   ;;  %v929_v19 = vld [vmem:[%s1170_s2 + $0x18] sm:$0xff]   ;;  %v932_v21 = vld [vmem:[%s1170_s2 + $0x20] sm:$0xff]  }
   0x8   :  { %806 = vmatprep.subr.bf16.mxu0 %v916_v2  ;;  %868 = vmatprep.subr.bf16.mxu1 %v947_v14  ;;  %v949_v20 = vld [vmem:[%s1172_s5 + $0x18] sm:$0xff]   ;;  %v950_v22 = vld [vmem:[%s1172_s5 + $0x20] sm:$0xff]   ;;  %v931_v23 = vld [vmem:[%s1169_s0 + $0x28] sm:$0xff]  }
   0x9   :  { %v934_v24 = vld [vmem:[%s1169_s0 + $0x30] sm:$0xff]   ;;  %v933_v25 = vld [vmem:[%s1170_s2 + $0x28] sm:$0xff]   ;;  %v935_v28 = vld [vmem:[%s1169_s0 + $0x38] sm:$0xff]  }
   0xa   :  { %v951_v26 = vld [vmem:[%s1172_s5 + $0x28] sm:$0xff]   ;;  %v936_v27 = vld [vmem:[%s1170_s2 + $0x30] sm:$0xff]   ;;  %v938_v29 = vld [vmem:[%s1171_s1] sm:$0xff]  }
   0xb   :  { %807 = vmatpush3.bf16.msra.mxu0 %v916_v2  ;;  %869 = vmatpush3.bf16.msra.mxu1 %v947_v14  ;;  %v937_v30 = vld [vmem:[%s1170_s2 + $0x38] sm:$0xff]   ;;  %v939_v31 = vld [vmem:[%s1171_s1 + $0x8] sm:$0xff]   ;;  %v940_v32 = vld [vmem:[%s1171_s1 + $0x10] sm:$0xff]  }
   0xc   :  { %808 = vmatprep.subr.bf16.mxu0 %v917_v3  ;;  %870 = vmatprep.subr.bf16.mxu1 %v948_v17  ;;  %v941_v33 = vld [vmem:[%s1171_s1 + $0x18] sm:$0xff]   ;;  %v942_v34 = vld [vmem:[%s1171_s1 + $0x20] sm:$0xff]   ;;  %v943_v35 = vld [vmem:[%s1171_s1 + $0x28] sm:$0xff]  }
   0xd   :  { %v944_v36 = vld [vmem:[%s1171_s1 + $0x30] sm:$0xff]   ;;  %v945_v37 = vld [vmem:[%s1171_s1 + $0x38] sm:$0xff]   ;;  %v744_v40 = vld [vmem:[%s1173_s4] ss:$0 sm:$0xff] }
   0xe   :  { %v952_v38 = vld [vmem:[%s1172_s5 + $0x30] sm:$0xff]   ;;  %v953_v39 = vld [vmem:[%s1172_s5 + $0x38] sm:$0xff]  }
   0xf   :  { %809 = vmatpush3.bf16.msra.mxu0 %v917_v3  ;;  %871 = vmatpush3.bf16.msra.mxu1 %v948_v17 }
  0x10   :  { %810 = vmatprep.subr.bf16.mxu0 %v918_v5  ;;  %872 = vmatprep.subr.bf16.mxu1 %v949_v20 }
  0x13   :  { %811 = vmatpush3.bf16.msra.mxu0 %v918_v5  ;;  %873 = vmatpush3.bf16.msra.mxu1 %v949_v20 }
  0x14   :  { %812 = vmatprep.subr.bf16.mxu0 %v919_v6  ;;  %874 = vmatprep.subr.bf16.mxu1 %v950_v22 }
  0x17   :  { %813 = vmatpush3.bf16.msra.mxu0 %v919_v6  ;;  %875 = vmatpush3.bf16.msra.mxu1 %v950_v22 }
  0x18   :  { %814 = vmatprep.subr.bf16.mxu0 %v920_v7  ;;  %876 = vmatprep.subr.bf16.mxu1 %v951_v26 }
  0x1b   :  { %815 = vmatpush3.bf16.msra.mxu0 %v920_v7  ;;  %877 = vmatpush3.bf16.msra.mxu1 %v951_v26 }
  0x1c   :  { %816 = vmatprep.subr.bf16.mxu0 %v921_v8  ;;  %878 = vmatprep.subr.bf16.mxu1 %v952_v38 }
  0x1f   :  { %817 = vmatpush3.bf16.msra.mxu0 %v921_v8  ;;  %879 = vmatpush3.bf16.msra.mxu1 %v952_v38 }
  0x20   :  { %834 = vmatprep.subr.bf16.mxu0 %v924_v9  ;;  %880 = vmatprep.subr.bf16.mxu1 %v953_v39 }
  0x22   :  { %819 = vmatmul.mubr.bf16.vlgmr.msra.gmra.mrb[0].mxu0 %v923_v10 }
  0x23   :  { %835 = vmatpush3.bf16.msra.mxu0 %v924_v9  ;;  %822 = vmatprep.mubr.bf16.mxu0 %v926_v12 }
  0x24   :  { %836 = vmatprep.subr.bf16.mxu0 %v925_v11  ;;  %881 = vmatpush3.bf16.msra.mxu1 %v953_v39 }
  0x27   :  { %837 = vmatpush3.bf16.msra.mxu0 %v925_v11 }
  0x28   :  { %838 = vmatprep.subr.bf16.mxu0 %v928_v16 }
  0x2a   :  { %823 = vmatmul.mubr.bf16.gmra.mrb[4].mxu0 %v927_v15 }
  0x2b   :  { %839 = vmatpush3.bf16.msra.mxu0 %v928_v16  ;;  %826 = vmatprep.mubr.bf16.mxu0 %v930_v18 }
  0x2c   :  { %840 = vmatprep.subr.bf16.mxu0 %v929_v19 }
  0x2f   :  { %841 = vmatpush3.bf16.msra.mxu0 %v929_v19 }
  0x30   :  { %842 = vmatprep.subr.bf16.mxu0 %v932_v21 }
  0x32   :  { %827 = vmatmul.mubr.bf16.gmra.mrb[8].mxu0 %v931_v23 }
  0x33   :  { %843 = vmatpush3.bf16.msra.mxu0 %v932_v21  ;;  %830 = vmatprep.mubr.bf16.mxu0 %v934_v24 }
  0x34   :  { %844 = vmatprep.subr.bf16.mxu0 %v933_v25 }
  0x37   :  { %845 = vmatpush3.bf16.msra.mxu0 %v933_v25 }
  0x38   :  { %846 = vmatprep.subr.bf16.mxu0 %v936_v27 }
  0x3a   :  { %831 = vmatmul.mubr.bf16.gmra.mrb[12].mxu0 %v935_v28 }
  0x3b   :  { %847 = vmatpush3.bf16.msra.mxu0 %v936_v27  ;;  %850 = vmatprep.mubr.bf16.mxu0 %v938_v29 }
  0x3c   :  { %848 = vmatprep.subr.bf16.mxu0 %v937_v30 }
  0x3f   :  { %849 = vmatpush3.bf16.msra.mxu0 %v937_v30 }
  0x42   :  { %851 = vmatmul.mubr.bf16.vlgmr.msra.gmra.mrb[0].mxu0 %v939_v31 }
  0x43   :  { %854 = vmatprep.mubr.bf16.mxu0 %v940_v32 }
  0x4a   :  { %855 = vmatmul.mubr.bf16.gmra.mrb[4].mxu0 %v941_v33  ;;  %v745_v33 = vld [vmem:[%s1174_s6] ss:$0 sm:$0xff] }
  0x4b   :  { %858 = vmatprep.mubr.bf16.mxu0 %v942_v34 }
  0x52   :  { %859 = vmatmul.mubr.bf16.gmra.mrb[8].mxu0 %v943_v35 }
  0x53   :  { %862 = vmatprep.mubr.bf16.mxu0 %v944_v36 }
  0x5a   :  { %863 = vmatmul.mubr.bf16.gmra.mrb[12].mxu0 %v945_v37 }
 0x115   :  { %v852_v41 = vpop.f32.mrb[0].mxu0 }
 0x116   :  { %v486_v42 = vadd.f32 %v852_v41, %v744_v40  ;;  %v414_v43 = vpop.f32.mrb[1].mxu0 }
 0x117   :  { %v484_v44 = vadd.f32 %v744_v40, %v414_v43  ;;  %v853_v45 = vpop.f32.mrb[2].mxu0 }
 0x118   :  { %v487_v46 = vadd.f32 %v853_v45, %v744_v40  ;;  %v417_v47 = vpop.f32.mrb[3].mxu0  ;;  %v502_v49 = vmax.f32 %v486_v42, 0.0 }
 0x119   :  { %v485_v48 = vadd.f32 %v744_v40, %v417_v47  ;;  %v500_v51 = vmax.f32 %v484_v44, 0.0 }
 0x11a   :  { %v503_v50 = vmax.f32 %v487_v46, 0.0 }
 0x11b   :  { %v501_v52 = vmax.f32 %v485_v48, 0.0 }
 0x11c   :  { %v517_v53 = vpack.c.bf16 %v503_v50, %v502_v49 }
 0x11d   :  { %v856_v54 = vpop.f32.mrb[4].mxu0  ;;  %v516_v55 = vpack.c.bf16 %v501_v52, %v500_v51 }
 0x11e   :  { %v490_v56 = vadd.f32 %v856_v54, %v744_v40  ;;  %v430_v57 = vpop.f32.mrb[5].mxu0 }
 0x11f   :  { %v488_v58 = vadd.f32 %v744_v40, %v430_v57  ;;  %v857_v59 = vpop.f32.mrb[6].mxu0  ;;  %882 = vmatprep.mubr.bf16.mxu1 %v516_v55 }
 0x120   :  { %v491_v60 = vadd.f32 %v857_v59, %v744_v40  ;;  %v433_v61 = vpop.f32.mrb[7].mxu0  ;;  %883 = vmatmul.mubr.bf16.vlgmr.msra.gmra.mrb[0].mxu1 %v517_v53  ;;  %v506_v63 = vmax.f32 %v490_v56, 0.0 }
 0x121   :  { %v489_v62 = vadd.f32 %v744_v40, %v433_v61  ;;  %v504_v1 = vmax.f32 %v488_v58, 0.0 }
 0x122   :  { %v507_v0 = vmax.f32 %v491_v60, 0.0 }
 0x123   :  { %v505_v2 = vmax.f32 %v489_v62, 0.0 }
 0x124   :  { %v519_v3 = vpack.c.bf16 %v507_v0, %v506_v63 }
 0x125   :  { %v518_v4 = vpack.c.bf16 %v505_v2, %v504_v1  ;;  %v860_v5 = vpop.f32.mrb[8].mxu0 }
 0x126   :  { %v494_v6 = vadd.f32 %v860_v5, %v744_v40  ;;  %v446_v7 = vpop.f32.mrb[9].mxu0 }
 0x127   :  { %v492_v8 = vadd.f32 %v744_v40, %v446_v7  ;;  %v861_v9 = vpop.f32.mrb[10].mxu0  ;;  %886 = vmatprep.mubr.bf16.mxu1 %v518_v4 }
 0x128   :  { %v495_v10 = vadd.f32 %v861_v9, %v744_v40  ;;  %v449_v11 = vpop.f32.mrb[11].mxu0  ;;  %887 = vmatmul.mubr.bf16.gmra.mrb[4].mxu1 %v519_v3  ;;  %v510_v13 = vmax.f32 %v494_v6, 0.0 }
 0x129   :  { %v493_v12 = vadd.f32 %v744_v40, %v449_v11  ;;  %v508_v15 = vmax.f32 %v492_v8, 0.0 }
 0x12a   :  { %v511_v14 = vmax.f32 %v495_v10, 0.0 }
 0x12b   :  { %v509_v16 = vmax.f32 %v493_v12, 0.0 }
 0x12c   :  { %v521_v17 = vpack.c.bf16 %v511_v14, %v510_v13 }
 0x12d   :  { %v520_v18 = vpack.c.bf16 %v509_v16, %v508_v15  ;;  %v864_v19 = vpop.f32.mrb[12].mxu0 }
 0x12e   :  { %v498_v20 = vadd.f32 %v864_v19, %v744_v40  ;;  %v462_v21 = vpop.f32.mrb[13].mxu0 }
 0x12f   :  { %v496_v22 = vadd.f32 %v744_v40, %v462_v21  ;;  %v865_v23 = vpop.f32.mrb[14].mxu0  ;;  %890 = vmatprep.mubr.bf16.mxu1 %v520_v18 }
 0x130   :  { %v499_v24 = vadd.f32 %v865_v23, %v744_v40  ;;  %v465_v25 = vpop.f32.mrb[15].mxu0  ;;  %891 = vmatmul.mubr.bf16.gmra.mrb[8].mxu1 %v521_v17  ;;  %v514_v27 = vmax.f32 %v498_v20, 0.0 }
 0x131   :  { %v497_v26 = vadd.f32 %v744_v40, %v465_v25  ;;  %v512_v29 = vmax.f32 %v496_v22, 0.0 }
 0x132   :  { %v515_v28 = vmax.f32 %v499_v24, 0.0 }
 0x133   :  { %v513_v30 = vmax.f32 %v497_v26, 0.0 }
 0x134   :  { %v523_v31 = vpack.c.bf16 %v515_v28, %v514_v27 }
 0x135   :  { %v522_v32 = vpack.c.bf16 %v513_v30, %v512_v29 }
 0x137   :  { %894 = vmatprep.mubr.bf16.mxu1 %v522_v32 }
 0x138   :  { %895 = vmatmul.mubr.bf16.gmra.mrb[12].mxu1 %v523_v31 }
 0x1f3   :  { %v884_v34 = vpop.f32.mrb[0].mxu1 }
 0x1f4   :  { %v638_v35 = vadd.f32 %v884_v34, %v745_v33  ;;  %v629_v36 = vpop.f32.mrb[1].mxu1 }
 0x1f5   :  { %v630_v37 = vadd.f32 %v745_v33, %v629_v36  ;;  %v885_v38 = vpop.f32.mrb[2].mxu1 }
 0x1f6   :  { %694 = vst [vmem:[%s1175_s7 + $0x10] sm:$0xff] %v638_v35  ;;  %v641_v39 = vadd.f32 %v885_v38, %v745_v33  ;;  %v632_v40 = vpop.f32.mrb[3].mxu1 }
 0x1f7   :  { %692 = vst [vmem:[%s1175_s7] sm:$0xff] %v630_v37  ;;  %v633_v41 = vadd.f32 %v745_v33, %v632_v40 }
 0x1f8   :  { %695 = vst [vmem:[%s1175_s7 + $0x18] sm:$0xff] %v641_v39 }
 0x1f9   :  { %693 = vst [vmem:[%s1175_s7 + $0x8] sm:$0xff] %v633_v41 }
 0x1fb   :  { %v888_v42 = vpop.f32.mrb[4].mxu1 }
 0x1fc   :  { %v654_v43 = vadd.f32 %v888_v42, %v745_v33  ;;  %v645_v44 = vpop.f32.mrb[5].mxu1 }
 0x1fd   :  { %v646_v45 = vadd.f32 %v745_v33, %v645_v44  ;;  %v889_v46 = vpop.f32.mrb[6].mxu1 }
 0x1fe   :  { %698 = vst [vmem:[%s1175_s7 + $0x30] sm:$0xff] %v654_v43  ;;  %v657_v47 = vadd.f32 %v889_v46, %v745_v33  ;;  %v648_v48 = vpop.f32.mrb[7].mxu1 }
 0x1ff   :  { %696 = vst [vmem:[%s1175_s7 + $0x20] sm:$0xff] %v646_v45  ;;  %v649_v49 = vadd.f32 %v745_v33, %v648_v48 }
 0x200   :  { %699 = vst [vmem:[%s1175_s7 + $0x38] sm:$0xff] %v657_v47 }
 0x201   :  { %697 = vst [vmem:[%s1175_s7 + $0x28] sm:$0xff] %v649_v49 }
 0x203   :  { %v892_v50 = vpop.f32.mrb[8].mxu1 }
 0x204   :  { %v670_v51 = vadd.f32 %v892_v50, %v745_v33  ;;  %v661_v52 = vpop.f32.mrb[9].mxu1 }
 0x205   :  { %v662_v53 = vadd.f32 %v745_v33, %v661_v52  ;;  %v893_v54 = vpop.f32.mrb[10].mxu1 }
 0x206   :  { %702 = vst [vmem:[%s1175_s7 + $0x50] sm:$0xff] %v670_v51  ;;  %v673_v55 = vadd.f32 %v893_v54, %v745_v33  ;;  %v664_v56 = vpop.f32.mrb[11].mxu1 }
 0x207   :  { %700 = vst [vmem:[%s1175_s7 + $0x40] sm:$0xff] %v662_v53  ;;  %v665_v57 = vadd.f32 %v745_v33, %v664_v56 }
 0x208   :  { %703 = vst [vmem:[%s1175_s7 + $0x58] sm:$0xff] %v673_v55 }
 0x209   :  { %701 = vst [vmem:[%s1175_s7 + $0x48] sm:$0xff] %v665_v57 }
 0x20b   :  { %v896_v58 = vpop.f32.mrb[12].mxu1 }
 0x20c   :  { %v686_v59 = vadd.f32 %v896_v58, %v745_v33  ;;  %v677_v60 = vpop.f32.mrb[13].mxu1 }
 0x20d   :  { %v678_v61 = vadd.f32 %v745_v33, %v677_v60  ;;  %v897_v62 = vpop.f32.mrb[14].mxu1 }
 0x20e   :  { %706 = vst [vmem:[%s1175_s7 + $0x70] sm:$0xff] %v686_v59  ;;  %v689_v63 = vadd.f32 %v897_v62, %v745_v33  ;;  %v680_v0 = vpop.f32.mrb[15].mxu1 }
 0x20f   :  { %704 = vst [vmem:[%s1175_s7 + $0x60] sm:$0xff] %v678_v61  ;;  %v681_v1 = vadd.f32 %v745_v33, %v680_v0 }
 0x210   :  { %707 = vst [vmem:[%s1175_s7 + $0x78] sm:$0xff] %v689_v63 }
 0x211   :  { %705 = vst [vmem:[%s1175_s7 + $0x68] sm:$0xff] %v681_v1 }

</bundles_post_ra>
